<compile_context>
chip_gen: v7x
topology: tpu7x:2x2x1
jax: 0.10.0
libtpu: 0.0.40
codegen_flags: <defaults>
</compile_context>

<pallas_src>
import jax
import jax.numpy as jnp
from jax.experimental import pallas as pl
from jax.experimental.pallas import tpu as pltpu


START_TOKEN_IDX = 0
END_TOKEN_IDX = 1
_LANE = 128


def _head_kernel(feat_ref, mask_ref,
                 w1_ref, b1_ref, w2_ref, b2_ref, wout_ref, bout_ref,
                 out_ref,
                 acc_ref, den_ref):
    s = pl.program_id(1)
    ns = pl.num_programs(1)

    @pl.when(s == 0)
    def _init():
        acc_ref[...] = jnp.zeros_like(acc_ref)
        den_ref[...] = jnp.zeros_like(den_ref)

    feats = feat_ref[...].astype(jnp.float32)           # (TB, TS, H)
    mask = mask_ref[...]                                 # (TB, TS, 1) f32

    # Masked partial sums over this sequence tile (VPU mul + sublane reduce; the
    # kernel is HBM-bound on the feature stream, so this hides under the DMA).
    acc_ref[...] += jnp.sum(feats * mask, axis=1)        # (TB, H)
    den_ref[...] += jnp.sum(mask, axis=1)                # (TB, 1)

    @pl.when(s == ns - 1)
    def _finalize():
        # NOTE: matches reference behavior (NaN/Inf) if a row's effective mask sums to 0.
        pooled = acc_ref[...] / den_ref[...]                                   # (TB, H)
        h1 = jnp.tanh(
            jnp.dot(pooled, w1_ref[...], preferred_element_type=jnp.float32) + b1_ref[...])
        h2 = jnp.tanh(
            jnp.dot(h1, w2_ref[...], preferred_element_type=jnp.float32) + b2_ref[...])
        out = jnp.dot(h2, wout_ref[...], preferred_element_type=jnp.float32) + bout_ref[...]
        out_ref[...] = out.astype(out_ref.dtype)


def _round_up(x, m):
    return (x + m - 1) // m * m


def _choose_batch_tile(B, target=128):
    """Largest batch tile <= target that divides B and satisfies (tb % 8 == 0 or tb == B)."""
    if B <= target:
        return B
    best = None
    for t in range(8, target + 1, 8):
        if B % t == 0:
            best = t
    return best if best is not None else B


def _choose_seq_tile(S, tb, H, feat_itemsize, budget_bytes=2 * 1024 * 1024):
    """Largest seq tile (multiple of 8, divides S) keeping a feature block <= ~2 MiB."""
    if S <= 8:
        return S
    target = max(8, budget_bytes // max(1, tb * H * feat_itemsize))
    target = min(target, S)
    best = None
    for t in range(8, target + 1, 8):
        if S % t == 0:
            best = t
    return best if best is not None else S


def classification_head_mean_pool(features, attention_mask, input_ids, params,
                                  *, tb=None, ts=None):
    """features: (B,S,H) f32/bf16; attention_mask: (B,S); input_ids: (B,S) int."""
    B, S, H = features.shape
    L = params["wout"].shape[1]

    # Fold the start/end special-token zeroing into the mask up front: removes the
    # (B, S) int32 ids stream and two compares/selects per tile from the kernel.
    special = jnp.logical_or(input_ids == START_TOKEN_IDX, input_ids == END_TOKEN_IDX)
    eff_mask = jnp.where(special, 0.0, attention_mask.astype(jnp.float32))
    eff_mask = eff_mask[:, :, None]                      # (B, S, 1): tiles with features

    # Pad label dim to a full 128-lane width -> dense final matmul + unmasked stores.
    lp = _round_up(max(L, 1), _LANE)
    wout = jnp.pad(params["wout"].astype(jnp.float32), ((0, 0), (0, lp - L)))
    bout = jnp.pad(params["bout"].astype(jnp.float32), ((0, 0), (0, lp - L)))

    if tb is None:
        tb = _choose_batch_tile(B)
    if ts is None:
        ts = _choose_seq_tile(S, tb, H, jnp.dtype(features.dtype).itemsize)

    assert B % tb == 0 and (tb % 8 == 0 or tb == B), (B, tb)
    assert S % ts == 0 and (ts % 8 == 0 or ts == S), (S, ts)
    grid = (B // tb, S // ts)

    out_pad = pl.pallas_call(
        _head_kernel,
        out_shape=jax.ShapeDtypeStruct((B, lp), jnp.float32),
        grid_spec=pltpu.PrefetchScalarGridSpec(
            num_scalar_prefetch=0,
            grid=grid,
            in_specs=[
                # streamed, double-buffered inputs
                pl.BlockSpec((tb, ts, H), lambda b, s: (b, s, 0)),   # features
                pl.BlockSpec((tb, ts, 1), lambda b, s: (b, s, 0)),   # effective mask
                # resident weights / biases (constant block index -> DMA'd once)
                pl.BlockSpec((H, H), lambda b, s: (0, 0)),           # w1
                pl.BlockSpec((1, H), lambda b, s: (0, 0)),           # b1
                pl.BlockSpec((H, H), lambda b, s: (0, 0)),           # w2
                pl.BlockSpec((1, H), lambda b, s: (0, 0)),           # b2
                pl.BlockSpec((H, lp), lambda b, s: (0, 0)),          # wout (padded)
                pl.BlockSpec((1, lp), lambda b, s: (0, 0)),          # bout (padded)
            ],
            out_specs=pl.BlockSpec((tb, lp), lambda b, s: (b, 0)),
            scratch_shapes=[
                pltpu.VMEM((tb, H), jnp.float32),   # pooled-sum accumulator
                pltpu.VMEM((tb, 1), jnp.float32),   # mask-count accumulator
            ],
        ),
        compiler_params=pltpu.CompilerParams(
            dimension_semantics=("parallel", "arbitrary"),
            # Raise v5e's 16 MiB scoped default; still well under v7x's 64 MiB physical.
            vmem_limit_bytes=32 * 1024 * 1024,
        ),
    )(
        features, eff_mask,
        params["w1"].astype(jnp.float32), params["b1"].astype(jnp.float32),
        params["w2"].astype(jnp.float32), params["b2"].astype(jnp.float32),
        wout, bout,
    )
    return out_pad[:, :L]


def init_params(key, hidden_size, num_labels):
    k1, k2, k3, k4, k5, k6 = jax.random.split(key, 6)
    scale = 1.0 / jnp.sqrt(hidden_size)
    # weights stored as (in, out): y = x @ W + b  (== PyTorch y = x @ W_pt.T + b)
    return {
        "w1": jax.random.uniform(k1, (hidden_size, hidden_size), jnp.float32, -scale, scale),
        "b1": jax.random.uniform(k2, (1, hidden_size), jnp.float32, -scale, scale),
        "w2": jax.random.uniform(k3, (hidden_size, hidden_size), jnp.float32, -scale, scale),
        "b2": jax.random.uniform(k4, (1, hidden_size), jnp.float32, -scale, scale),
        "wout": jax.random.uniform(k5, (hidden_size, num_labels), jnp.float32, -scale, scale),
        "bout": jax.random.uniform(k6, (1, num_labels), jnp.float32, -scale, scale),
    }


def reference_forward(features, attention_mask, input_ids, params):
    feats = features.astype(jnp.float32)
    mask = jnp.where(
        jnp.logical_or(input_ids == START_TOKEN_IDX, input_ids == END_TOKEN_IDX),
        0.0, attention_mask.astype(jnp.float32))
    pooled = jnp.sum(feats * mask[:, :, None], axis=1) / jnp.sum(mask, axis=1, keepdims=True)
    h1 = jnp.tanh(pooled @ params["w1"] + params["b1"])
    h2 = jnp.tanh(h1 @ params["w2"] + params["b2"])
    return h2 @ params["wout"] + params["bout"]


if __name__ == "__main__":
    B, S, H, L = 16, 64, 32, 4

    key = jax.random.PRNGKey(0)
    k_feat, k_par = jax.random.split(key)

    # Stream features in bf16 (halves the dominant HBM traffic); kernel accumulates in f32.
    features = jax.random.normal(k_feat, (B, S, H), dtype=jnp.float32).astype(jnp.bfloat16)

    attention_mask = jnp.ones((B, S), dtype=jnp.float32)
    attention_mask = attention_mask.at[B // 2:, S - 8:].set(0.0)   # some padded rows

    # first token is <s> (idx 0), last token is </s> (idx 1), rest are "real" tokens
    input_ids = jnp.full((B, S), 5, dtype=jnp.int32)
    input_ids = input_ids.at[:, 0].set(START_TOKEN_IDX)
    input_ids = input_ids.at[:, -1].set(END_TOKEN_IDX)

    params = init_params(k_par, H, L)

    # tb=8, ts=16 -> grid=(2, 4): exercises the parallel batch axis, the sequence-axis
    # accumulation, and the pl.when finalize path.
    out = classification_head_mean_pool(features, attention_mask, input_ids, params,
                                        tb=8, ts=16)
    out = jax.block_until_ready(out)

    ref = reference_forward(features, attention_mask, input_ids, params)
    assert out.shape == (B, L)
    # tolerance covers MXU default-precision / accumulation-order differences vs XLA
    assert jnp.allclose(out, ref, atol=1e-2, rtol=1e-2), "mismatch vs JAX reference"

    print("KERNEL_OK")
</pallas_src>

<mosaic_0001>
module attributes {stable_mosaic.version = 11 : i64} {
  func.func @_head_kernel(%arg0: i32, %arg1: i32, %arg2: memref<8x16x32xbf16, #tpu.memory_space<vmem>>, %arg3: memref<8x16x1xf32, #tpu.memory_space<vmem>>, %arg4: memref<32x32xf32, #tpu.memory_space<vmem>>, %arg5: memref<1x32xf32, #tpu.memory_space<vmem>>, %arg6: memref<32x32xf32, #tpu.memory_space<vmem>>, %arg7: memref<1x32xf32, #tpu.memory_space<vmem>>, %arg8: memref<32x128xf32, #tpu.memory_space<vmem>>, %arg9: memref<1x128xf32, #tpu.memory_space<vmem>>, %arg10: memref<8x128xf32, #tpu.memory_space<vmem>>, %arg11: memref<8x32xf32, #tpu.memory_space<vmem>>, %arg12: memref<8x1xf32, #tpu.memory_space<vmem>>) attributes {dimension_semantics = [#tpu.dimension_semantics<parallel>, #tpu.dimension_semantics<arbitrary>], iteration_bounds = array<i64: 2, 4>, scalar_prefetch = 0 : i64, scratch_operands = 2 : i64, tpu.core_type = #tpu.core_type<tc>, window_params = [{transform_indices = @transform_0, window_bounds = array<i64: 8, 16, 32>}, {transform_indices = @transform_1, window_bounds = array<i64: 8, 16, 1>}, {pipeline_mode = #tpu.pipeline_mode<synchronous>, transform_indices = @transform_2, window_bounds = array<i64: 32, 32>}, {pipeline_mode = #tpu.pipeline_mode<synchronous>, transform_indices = @transform_3, window_bounds = array<i64: 1, 32>}, {pipeline_mode = #tpu.pipeline_mode<synchronous>, transform_indices = @transform_4, window_bounds = array<i64: 32, 32>}, {pipeline_mode = #tpu.pipeline_mode<synchronous>, transform_indices = @transform_5, window_bounds = array<i64: 1, 32>}, {pipeline_mode = #tpu.pipeline_mode<synchronous>, transform_indices = @transform_6, window_bounds = array<i64: 32, 128>}, {pipeline_mode = #tpu.pipeline_mode<synchronous>, transform_indices = @transform_7, window_bounds = array<i64: 1, 128>}, {transform_indices = @transform_8, window_bounds = array<i64: 8, 128>}]} {
    %c0_i32 = arith.constant 0 : i32
    %0 = arith.cmpi eq, %arg1, %c0_i32 : i32
    %1 = arith.extui %0 : i1 to i32
    %c0_i32_0 = arith.constant 0 : i32
    %2 = arith.cmpi ne, %1, %c0_i32_0 : i32
    scf.if %2 {
      %cst_16 = arith.constant 0.000000e+00 : f32
      %19 = vector.broadcast %cst_16 : f32 to vector<8x32xf32>
      %c0_17 = arith.constant 0 : index
      %c0_18 = arith.constant 0 : index
      %20 = vector.load %arg11[%c0_17, %c0_18] : memref<8x32xf32, #tpu.memory_space<vmem>>, vector<8x32xf32>
      tpu.vector_store %arg11[%c0_17, %c0_18], %19 {strides = array<i32>} : memref<8x32xf32, #tpu.memory_space<vmem>>, vector<8x32xf32>,
      %cst_19 = arith.constant 0.000000e+00 : f32
      %21 = vector.broadcast %cst_19 : f32 to vector<8x1xf32>
      %c0_20 = arith.constant 0 : index
      %c0_21 = arith.constant 0 : index
      %22 = vector.load %arg12[%c0_20, %c0_21] : memref<8x1xf32, #tpu.memory_space<vmem>>, vector<8x1xf32>
      tpu.vector_store %arg12[%c0_20, %c0_21], %21 {strides = array<i32>} : memref<8x1xf32, #tpu.memory_space<vmem>>, vector<8x1xf32>,
    } else {
    }
    %c0 = arith.constant 0 : index
    %c0_1 = arith.constant 0 : index
    %c0_2 = arith.constant 0 : index
    %3 = vector.load %arg2[%c0, %c0_1, %c0_2] : memref<8x16x32xbf16, #tpu.memory_space<vmem>>, vector<8x16x32xbf16>
    %4 = arith.extf %3 : vector<8x16x32xbf16> to vector<8x16x32xf32>
    %c0_3 = arith.constant 0 : index
    %c0_4 = arith.constant 0 : index
    %c0_5 = arith.constant 0 : index
    %5 = vector.load %arg3[%c0_3, %c0_4, %c0_5] : memref<8x16x1xf32, #tpu.memory_space<vmem>>, vector<8x16x1xf32>
    %c0_6 = arith.constant 0 : index
    %c0_7 = arith.constant 0 : index
    %6 = vector.load %arg11[%c0_6, %c0_7] : memref<8x32xf32, #tpu.memory_space<vmem>>, vector<8x32xf32>
    %7 = vector.broadcast %5 : vector<8x16x1xf32> to vector<8x16x32xf32>
    %8 = arith.mulf %4, %7 : vector<8x16x32xf32>
    %cst = arith.constant dense<0.000000e+00> : vector<8x32xf32>
    %9 = vector.multi_reduction <add>, %8, %cst [1] : vector<8x16x32xf32> to vector<8x32xf32>
    %10 = arith.addf %6, %9 : vector<8x32xf32>
    %c0_8 = arith.constant 0 : index
    %c0_9 = arith.constant 0 : index
    %11 = vector.load %arg11[%c0_8, %c0_9] : memref<8x32xf32, #tpu.memory_space<vmem>>, vector<8x32xf32>
    tpu.vector_store %arg11[%c0_8, %c0_9], %10 {strides = array<i32>} : memref<8x32xf32, #tpu.memory_space<vmem>>, vector<8x32xf32>,
    %c0_10 = arith.constant 0 : index
    %c0_11 = arith.constant 0 : index
    %12 = vector.load %arg12[%c0_10, %c0_11] : memref<8x1xf32, #tpu.memory_space<vmem>>, vector<8x1xf32>
    %cst_12 = arith.constant dense<0.000000e+00> : vector<8x1xf32>
    %13 = vector.multi_reduction <add>, %5, %cst_12 [1] : vector<8x16x1xf32> to vector<8x1xf32>
    %14 = arith.addf %12, %13 : vector<8x1xf32>
    %c0_13 = arith.constant 0 : index
    %c0_14 = arith.constant 0 : index
    %15 = vector.load %arg12[%c0_13, %c0_14] : memref<8x1xf32, #tpu.memory_space<vmem>>, vector<8x1xf32>
    tpu.vector_store %arg12[%c0_13, %c0_14], %14 {strides = array<i32>} : memref<8x1xf32, #tpu.memory_space<vmem>>, vector<8x1xf32>,
    %c3_i32 = arith.constant 3 : i32
    %16 = arith.cmpi eq, %arg1, %c3_i32 : i32
    %17 = arith.extui %16 : i1 to i32
    %c0_i32_15 = arith.constant 0 : i32
    %18 = arith.cmpi ne, %17, %c0_i32_15 : i32
    scf.if %18 {
      %c0_16 = arith.constant 0 : index
      %c0_17 = arith.constant 0 : index
      %19 = vector.load %arg11[%c0_16, %c0_17] : memref<8x32xf32, #tpu.memory_space<vmem>>, vector<8x32xf32>
      %c0_18 = arith.constant 0 : index
      %c0_19 = arith.constant 0 : index
      %20 = vector.load %arg12[%c0_18, %c0_19] : memref<8x1xf32, #tpu.memory_space<vmem>>, vector<8x1xf32>
      %21 = vector.broadcast %20 : vector<8x1xf32> to vector<8x32xf32>
      %22 = arith.divf %19, %21 : vector<8x32xf32>
      %c0_20 = arith.constant 0 : index
      %c0_21 = arith.constant 0 : index
      %23 = vector.load %arg4[%c0_20, %c0_21] : memref<32x32xf32, #tpu.memory_space<vmem>>, vector<32x32xf32>
      %cst_22 = arith.constant dense<0.000000e+00> : vector<8x32xf32>
      %24 = tpu.matmul %22, %23, %cst_22 {dimension_numbers = #tpu.dot_dimension_numbers<[1], [0], [0], [1], [0, 0, 1, 1], [], []>} : vector<8x32xf32>, vector<32x32xf32>, vector<8x32xf32> -> vector<8x32xf32>
      %c0_23 = arith.constant 0 : index
      %c0_24 = arith.constant 0 : index
      %25 = vector.load %arg5[%c0_23, %c0_24] : memref<1x32xf32, #tpu.memory_space<vmem>>, vector<1x32xf32>
      %26 = vector.broadcast %25 : vector<1x32xf32> to vector<8x32xf32>
      %27 = arith.addf %24, %26 : vector<8x32xf32>
      %28 = math.tanh %27 : vector<8x32xf32>
      %c0_25 = arith.constant 0 : index
      %c0_26 = arith.constant 0 : index
      %29 = vector.load %arg6[%c0_25, %c0_26] : memref<32x32xf32, #tpu.memory_space<vmem>>, vector<32x32xf32>
      %cst_27 = arith.constant dense<0.000000e+00> : vector<8x32xf32>
      %30 = tpu.matmul %28, %29, %cst_27 {dimension_numbers = #tpu.dot_dimension_numbers<[1], [0], [0], [1], [0, 0, 1, 1], [], []>} : vector<8x32xf32>, vector<32x32xf32>, vector<8x32xf32> -> vector<8x32xf32>
      %c0_28 = arith.constant 0 : index
      %c0_29 = arith.constant 0 : index
      %31 = vector.load %arg7[%c0_28, %c0_29] : memref<1x32xf32, #tpu.memory_space<vmem>>, vector<1x32xf32>
      %32 = vector.broadcast %31 : vector<1x32xf32> to vector<8x32xf32>
      %33 = arith.addf %30, %32 : vector<8x32xf32>
      %34 = math.tanh %33 : vector<8x32xf32>
      %c0_30 = arith.constant 0 : index
      %c0_31 = arith.constant 0 : index
      %35 = vector.load %arg8[%c0_30, %c0_31] : memref<32x128xf32, #tpu.memory_space<vmem>>, vector<32x128xf32>
      %cst_32 = arith.constant dense<0.000000e+00> : vector<8x128xf32>
      %36 = tpu.matmul %34, %35, %cst_32 {dimension_numbers = #tpu.dot_dimension_numbers<[1], [0], [0], [1], [0, 0, 1, 1], [], []>} : vector<8x32xf32>, vector<32x128xf32>, vector<8x128xf32> -> vector<8x128xf32>
      %c0_33 = arith.constant 0 : index
      %c0_34 = arith.constant 0 : index
      %37 = vector.load %arg9[%c0_33, %c0_34] : memref<1x128xf32, #tpu.memory_space<vmem>>, vector<1x128xf32>
      %38 = vector.broadcast %37 : vector<1x128xf32> to vector<8x128xf32>
      %39 = arith.addf %36, %38 : vector<8x128xf32>
      %c0_35 = arith.constant 0 : index
      %c0_36 = arith.constant 0 : index
      %40 = vector.load %arg10[%c0_35, %c0_36] : memref<8x128xf32, #tpu.memory_space<vmem>>, vector<8x128xf32>
      tpu.vector_store %arg10[%c0_35, %c0_36], %39 {strides = array<i32>} : memref<8x128xf32, #tpu.memory_space<vmem>>, vector<8x128xf32>,
    } else {
    }
    return
  }
  func.func @transform_0(%arg0: i32, %arg1: i32) -> (i32, i32, i32) {
    %c0_i32 = arith.constant 0 : i32
    %c0_i32_0 = arith.constant 0 : i32
    return %arg0, %arg1, %c0_i32 : i32, i32, i32
  }
  func.func @transform_1(%arg0: i32, %arg1: i32) -> (i32, i32, i32) {
    %c0_i32 = arith.constant 0 : i32
    %c0_i32_0 = arith.constant 0 : i32
    return %arg0, %arg1, %c0_i32 : i32, i32, i32
  }
  func.func @transform_2(%arg0: i32, %arg1: i32) -> (i32, i32) {
    %c0_i32 = arith.constant 0 : i32
    %c0_i32_0 = arith.constant 0 : i32
    %c0_i32_1 = arith.constant 0 : i32
    return %c0_i32, %c0_i32_0 : i32, i32
  }
  func.func @transform_3(%arg0: i32, %arg1: i32) -> (i32, i32) {
    %c0_i32 = arith.constant 0 : i32
    %c0_i32_0 = arith.constant 0 : i32
    %c0_i32_1 = arith.constant 0 : i32
    return %c0_i32, %c0_i32_0 : i32, i32
  }
  func.func @transform_4(%arg0: i32, %arg1: i32) -> (i32, i32) {
    %c0_i32 = arith.constant 0 : i32
    %c0_i32_0 = arith.constant 0 : i32
    %c0_i32_1 = arith.constant 0 : i32
    return %c0_i32, %c0_i32_0 : i32, i32
  }
  func.func @transform_5(%arg0: i32, %arg1: i32) -> (i32, i32) {
    %c0_i32 = arith.constant 0 : i32
    %c0_i32_0 = arith.constant 0 : i32
    %c0_i32_1 = arith.constant 0 : i32
    return %c0_i32, %c0_i32_0 : i32, i32
  }
  func.func @transform_6(%arg0: i32, %arg1: i32) -> (i32, i32) {
    %c0_i32 = arith.constant 0 : i32
    %c0_i32_0 = arith.constant 0 : i32
    %c0_i32_1 = arith.constant 0 : i32
    return %c0_i32, %c0_i32_0 : i32, i32
  }
  func.func @transform_7(%arg0: i32, %arg1: i32) -> (i32, i32) {
    %c0_i32 = arith.constant 0 : i32
    %c0_i32_0 = arith.constant 0 : i32
    %c0_i32_1 = arith.constant 0 : i32
    return %c0_i32, %c0_i32_0 : i32, i32
  }
  func.func @transform_8(%arg0: i32, %arg1: i32) -> (i32, i32) {
    %c0_i32 = arith.constant 0 : i32
    %c0_i32_0 = arith.constant 0 : i32
    return %arg0, %c0_i32 : i32, i32
  }
}

</mosaic_0001>

<bundles_post_ra>
// kernel: tpu_custom_call.1
= control target key start
LH: loop header
LB: loop body
LE: loop exit
PB: predicated region body
PF: predicated region fallthrough
CT: control target
= control target key end

     0   :  { %s2021_s0 = inlined_call_operand.vmem [shape: bf16[16,64,32], index: 0, kind: input, shape index: {}]   ;;  %s2022_s1 = inlined_call_operand.vmem [shape: f32[16,64,1], index: 1, kind: input, shape index: {}]   ;;  %s2023_s2 = inlined_call_operand.vmem [shape: f32[32,32], index: 2, kind: input, shape index: {}]   ;;  %s2024_s3 = inlined_call_operand.vmem [shape: f32[1,32], index: 3, kind: input, shape index: {}]   ;;  %s2025_s4 = inlined_call_operand.vmem [shape: f32[32,32], index: 4, kind: input, shape index: {}]   ;;  %s2026_s5 = inlined_call_operand.vmem [shape: f32[1,32], index: 5, kind: input, shape index: {}]   ;;  %s2027_s6 = inlined_call_operand.vmem [shape: f32[32,128], index: 6, kind: input, shape index: {}]   ;;  %s2028_s7 = inlined_call_operand.vmem [shape: f32[1,128], index: 7, kind: input, shape index: {}]   ;;  %s2029_s8 = inlined_call_operand.hbm [shape: f32[16,128], index: 8, kind: output, shape index: {}]  }
   0x1   :  { %2034 = sst [smem:[#allocation14_spill]] %s2021_s0 }
   0x2   :  { %13 = vsyncpa [#allocation7], 0 }
   0x3   :  { %15 = vsyncpa [#allocation7 + $0x1], 0  ;;  %s1675_s27 = smov 0   ;;  %s1677_s28 = smov 0  }
   0x4   :  { %s1679_s29 = smov 0   ;;  %s1681_s30 = smov 0  }
   0x5   :  { %s1683_s9 = smov 0   ;;  %s1685_s10 = smov 0  }
   0x6   :  { %s1687_s11 = smov 0   ;;  %s1689_s12 = smov 0  }
   0x7   :  { %s1691_s13 = smov 0   ;;  %s1693_s14 = smov 0  }
   0x8 LB: > { %2035 = sst [smem:[#allocation9_spill]] %s1585_s27  ;;  %s1272_s15 = sadd.s32 4294967295, %s1621_s14   ;;  %s1621_s14 = sphi %s1693_s14, %s21_s14   ;;  %s1617_s13 = sphi %s1691_s13, %s2057_s13   ;;  %s1613_s12 = sphi %s1689_s12, %s2056_s12   ;;  %s1609_s11 = sphi %s1687_s11, %s2055_s11   ;;  %s1605_s10 = sphi %s1685_s10, %s2054_s10   ;;  %s1601_s9 = sphi %s1683_s9, %s2053_s9   ;;  %s1597_s30 = sphi %s1681_s30, %s2052_s30   ;;  %s1593_s29 = sphi %s1679_s29, %s2051_s29   ;;  %s1589_s28 = sphi %s1677_s28, %s2050_s28   ;;  %s1585_s27 = sphi %s1675_s27, %s2049_s27  }
   0x9   : > { %s1273_s16 = sadd.s32 4294967294, %s1621_s14   ;;  %s30_s17 = sadd.s32 1, %s1613_s12 }
   0xa   : > { %s33_s18 = sadd.s32 1, %s1617_s13  ;;  %p31_p0 = scmp.ge.s32.totalorder %s30_s17, 4 }
   0xb   : > { %s42_s19 = sadd.s32 1, %s1601_s9  ;;  %p49_p1 = scmp.ne.s32.totalorder %s1601_s9, %s1597_s30 }
   0xc   : > { %p50_p2 = scmp.eq.s32.totalorder %s1621_s14, 0  ;;  %s2059_s17 = smov (%p31_p0, %s30_s17), 0 }
   0xd   : > { %2036 = sst [smem:[#allocation10_spill]] %s2059_s17  ;;  %s2061_s18 = smov (!%p31_p0, %s33_s18), %s1617_s13 }
   0xe   : > { %s38_s20 = ssub.s32 %s1613_s12, %s2059_s17  ;;  %p1738_p3 = por %p50_p2, %p49_p1 }
   0xf   : > { %p35_p4 = scmp.ge.s32.totalorder %s2061_s18, 2  ;;  %s222_s22 = sadd.s32 1, %s1593_s29 }
  0x10   : > { %p232_p5 = scmp.ne.s32.totalorder %s1593_s29, %s1589_s28  ;;  %p233_p6 = scmp.eq.s32.totalorder %s1272_s15, 7 }
  0x11   : > { %s2063_s18 = smov (%p35_p4, %s2061_s18), 0  ;;  %p238_p8 = scmp.ne.s32.totalorder %s1589_s28, %s1585_s27 }
  0x12   : > { %2038 = sst [smem:[#allocation11_spill]] %s2063_s18  ;;  %p1747_p7 = por %p233_p6, %p232_p5 }
  0x13   : > { %s37_s24 = ssub.s32 %s1617_s13, %s2063_s18  ;;  %p239_p9 = scmp.eq.s32.totalorder %s1273_s16, 7 }
  0x14   : > { %s39_s25 = sor.u32 %s38_s20, %s37_s24  ;;  %p220_p10 = scmp.eq.s32.totalorder %s37_s24, 0 }
  0x15   : > { %p40_p11 = scmp.eq.s32.totalorder %s39_s25, 0  ;;  %p1755_p12 = por %p239_p9, %p238_p8 }
  0x16   : > { %s1760_s17 = scalar_select %p220_p10, %s1593_s29, %s222_s22  }
  0x17   : > { %s2040_s26 = scalar_select %p1755_p12, 1, 0 }
  0x18   : > { %s1763_s15 = scalar_select %p40_p11, %s1601_s9, %s42_s19  }
  0x19   : > { %2041 = sst [smem:[#allocation12_spill]] %s2040_s26  ;;  %p1275_p13 = scmp.ge.s32.totalorder %s1621_s14, 8 }
  0x1a   : > { %2042 = sst [smem:[#allocation13_spill]] %s1763_s15 }
  0x1b   : > { %273 = sbr.rel (%p1275_p13) target bundleno = 67 (0x43), region = 40 }
  0x22   : > { %276 = sbr.rel (!%p1738_p3) target bundleno = 52 (0x34), region = 44  ;;  %s278_s16 = sand.u32 (%p1738_p3), 1, %s1601_s9  }
  0x23   : > { %s1278_s20 = sshll.u32 (%p1738_p3), %s1613_s12, 1  ;;  %s1276_s24 = sshll.u32 (%p1738_p3), %s278_s16, 6 }
  0x24   : > { %s1302_s25 = sshll.u32 (%p1738_p3), %s1617_s13, 6  ;;  %s2043_s0 = sld [smem:[#allocation14_spill]] (%p1738_p3) }
  0x25   : > { %s284_s18 = sadd.s32 (%p1738_p3), %s1302_s25, %s1278_s20  ;;  %s280_s15 = scalar_lea.vmem (%p1738_p3), [#allocation4], %s1276_s24 }
  0x26   : > { %s1280_s27 = sshll.u32 (%p1738_p3), %s284_s18, 2 }
  0x2a   : > { %s286_s19 = scalar_lea.vmem %s2043_s0, %s1280_s27 }
  0x2b   : > { %v302_v0 = vld [vmem:[%s286_s19] sm:$0xff]  }
  0x2c   : > { %v306_v1 = vld [vmem:[%s286_s19 + $0x20] sm:$0xff]   ;;  %303 = vst [vmem:[%s280_s15] sm:$0xff] %v302_v0  }
  0x2d   : > { %v310_v2 = vld [vmem:[%s286_s19 + $0x40] sm:$0xff]   ;;  %307 = vst [vmem:[%s280_s15 + $0x8] sm:$0xff] %v306_v1  }
  0x2e   : > { %311 = vst [vmem:[%s280_s15 + $0x10] sm:$0xff] %v310_v2   ;;  %v314_v3 = vld [vmem:[%s286_s19 + $0x60] sm:$0xff]  }
  0x2f   : > { %v318_v4 = vld [vmem:[%s286_s19 + $0x80] sm:$0xff]   ;;  %315 = vst [vmem:[%s280_s15 + $0x18] sm:$0xff] %v314_v3  }
  0x30   : > { %v322_v5 = vld [vmem:[%s286_s19 + $0xa0] sm:$0xff]   ;;  %319 = vst [vmem:[%s280_s15 + $0x20] sm:$0xff] %v318_v4  }
  0x31   : > { %323 = vst [vmem:[%s280_s15 + $0x28] sm:$0xff] %v322_v5   ;;  %v326_v6 = vld [vmem:[%s286_s19 + $0xc0] sm:$0xff]  }
  0x32   : > { %v330_v7 = vld [vmem:[%s286_s19 + $0xe0] sm:$0xff]   ;;  %327 = vst [vmem:[%s280_s15 + $0x30] sm:$0xff] %v326_v6  }
  0x33   : > { %331 = vst [vmem:[%s280_s15 + $0x38] sm:$0xff] %v330_v7  }
  0x34 PF: > { %388 = sbr.rel (!%p1738_p3) target bundleno = 67 (0x43), region = 85  ;;  %s390_s27 = sand.u32 (%p1738_p3), 1, %s1601_s9  }
  0x35   : > { %s1283_s18 = sshll.u32 (%p1738_p3), %s1613_s12, 1  ;;  %s1281_s26 = sshll.u32 (%p1738_p3), %s390_s27, 7 }
  0x36   : > { %s1303_s16 = sshll.u32 (%p1738_p3), %s1617_s13, 6  ;;  %s392_s21 = scalar_lea.vmem (%p1738_p3), [#allocation5], %s1281_s26 }
  0x37   : > { %s396_s20 = sadd.s32 (%p1738_p3), %s1303_s16, %s1283_s18 }
  0x38   : > { %s1285_s24 = sshll.u32 (%p1738_p3), %s396_s20, 3 }
  0x39   : > { %s1782_s0 = scalar_lea.vmem (%p1738_p3), %s2022_s1, %s1285_s24 }
  0x3a   : > { %v456_v8 = vld [vmem:[%s1782_s0] sm:$0xff] (%p1738_p3)  ;;  %v458_v9 = vld [vmem:[%s1782_s0 + $0x8] sm:$0xff] (%p1738_p3) }
  0x3b   : > { %v460_v10 = vld [vmem:[%s1782_s0 + $0x40] sm:$0xff]  ;;  %457 = vst [vmem:[%s392_s21] sm:$0xff] %v456_v8  ;;  %459 = vst [vmem:[%s392_s21 + $0x8] sm:$0xff] %v458_v9  ;;  %v462_v11 = vld [vmem:[%s1782_s0 + $0x48] sm:$0xff] }
  0x3c   : > { %461 = vst [vmem:[%s392_s21 + $0x10] sm:$0xff] %v460_v10  ;;  %v464_v12 = vld [vmem:[%s1782_s0 + $0x80] sm:$0xff]  ;;  %v466_v13 = vld [vmem:[%s1782_s0 + $0x88] sm:$0xff]  ;;  %463 = vst [vmem:[%s392_s21 + $0x18] sm:$0xff] %v462_v11 }
  0x3d   : > { %465 = vst [vmem:[%s392_s21 + $0x20] sm:$0xff] %v464_v12  ;;  %467 = vst [vmem:[%s392_s21 + $0x28] sm:$0xff] %v466_v13  ;;  %v468_v14 = vld [vmem:[%s1782_s0 + $0xc0] sm:$0xff]  ;;  %v470_v15 = vld [vmem:[%s1782_s0 + $0xc8] sm:$0xff] }
  0x3e   : > { %v472_v16 = vld [vmem:[%s1782_s0 + $0x100] sm:$0xff]  ;;  %469 = vst [vmem:[%s392_s21 + $0x30] sm:$0xff] %v468_v14  ;;  %471 = vst [vmem:[%s392_s21 + $0x38] sm:$0xff] %v470_v15  ;;  %v474_v17 = vld [vmem:[%s1782_s0 + $0x108] sm:$0xff] }
  0x3f   : > { %473 = vst [vmem:[%s392_s21 + $0x40] sm:$0xff] %v472_v16  ;;  %v476_v18 = vld [vmem:[%s1782_s0 + $0x140] sm:$0xff]  ;;  %v478_v19 = vld [vmem:[%s1782_s0 + $0x148] sm:$0xff]  ;;  %475 = vst [vmem:[%s392_s21 + $0x48] sm:$0xff] %v474_v17 }
  0x40   : > { %477 = vst [vmem:[%s392_s21 + $0x50] sm:$0xff] %v476_v18  ;;  %479 = vst [vmem:[%s392_s21 + $0x58] sm:$0xff] %v478_v19  ;;  %v480_v20 = vld [vmem:[%s1782_s0 + $0x180] sm:$0xff]  ;;  %v482_v21 = vld [vmem:[%s1782_s0 + $0x188] sm:$0xff] }
  0x41   : > { %v484_v22 = vld [vmem:[%s1782_s0 + $0x1c0] sm:$0xff]  ;;  %481 = vst [vmem:[%s392_s21 + $0x60] sm:$0xff] %v480_v20  ;;  %483 = vst [vmem:[%s392_s21 + $0x68] sm:$0xff] %v482_v21  ;;  %v486_v23 = vld [vmem:[%s1782_s0 + $0x1c8] sm:$0xff] }
  0x42   : > { %485 = vst [vmem:[%s392_s21 + $0x70] sm:$0xff] %v484_v22  ;;  %487 = vst [vmem:[%s392_s21 + $0x78] sm:$0xff] %v486_v23 }
  0x43 PF: > { %p1286_p0 = scmp.ge.s32.totalorder %s1621_s14, 1  ;;  %p492_p1 = scmp.lt.s32.totalorder %s1621_s14, 9 }
  0x45   : > { %p493_p2 = pnand %p1286_p0, %p492_p1 }
  0x46   : > { %s499_s15 = sand.u32 (!%p493_p2), 1, %s1597_s30   ;;  %s540_s19 = sand.u32 (!%p493_p2), 1, %s1589_s28  }
  0x47   : > { %496 = sbr.rel (%p493_p2) target bundleno = 1075 (0x433), region = 123  ;;  %s1287_s27 = sshll.u32 (!%p493_p2), %s499_s15, 6 }
  0x48   : > { %s1288_s18 = sshll.u32 (!%p493_p2), %s499_s15, 7  ;;  %s1806_s26 = sshll.u32 (!%p493_p2), %s540_s19, 3 }
  0x49   : > { %s1808_s0 = scalar_lea.vmem (!%p493_p2), [#allocation4], %s1287_s27  ;;  %s1810_s16 = scalar_lea.vmem (!%p493_p2), [#allocation5], %s1288_s18 }
  0x4a   : > { %s542_s20 = scalar_lea.vmem (!%p493_p2), [#allocation6], %s1806_s26  ;;  %p1290_p3 = scmp.ne.s32.totalorder (!%p493_p2), %s1605_s10, 0 }
  0x4e   : > { %550 = sbr.rel (%p1290_p3) target bundleno = 85 (0x55), region = 135  ;;  %vm551_vm0 = vcmask (!%p1290_p3), 261120   ;;  %vm553_vm1 = vcmask (!%p1290_p3), 7168   ;;  %v1623_v24 = vmov (!%p1290_p3), 0.0  }
  0x4f   : > { %552 = vst.msk [vmem:[#allocation2] sm:$0xff] (!%p1290_p3), %vm551_vm0, %v1623_v24 }
  0x50   : > { %554 = vst.msk [vmem:[#allocation3] sm:$0xff] (!%p1290_p3), %vm553_vm1, %v1623_v24 }
  0x55 PF: > { %v589_v25 = vld [vmem:[%s1810_s16 + $0x10] sm:$0xff]  ;;  %vm799_vm2 = vcmask 7168   ;;  %v587_v26 = vld [vmem:[%s1810_s16] sm:$0xff]  ;;  %v590_v27 = vld [vmem:[%s1810_s16 + $0x18] sm:$0xff]  ;;  %v1624_v28 = vmov 0   ;;  %vm781_vm3 = vcmask 1041409  }
  0x56   : > { %1503 = vset.pattern.permute.xlu1 %v1624_v28  ;;  %1502 = vset.pattern.permute.xlu0 %v1624_v28  ;;  %v809_v29 = vsel %vm799_vm2, %v589_v25, 0.0  ;;  %v800_v30 = vsel %vm799_vm2, %v587_v26, 0.0  ;;  %v810_v31 = vsel %vm799_vm2, %v590_v27, 0.0  ;;  %v588_v32 = vld [vmem:[%s1810_s16 + $0x8] sm:$0xff]  ;;  %v591_v37 = vld [vmem:[%s1810_s16 + $0x20] sm:$0xff]  ;;  %v594_v38 = vld [vmem:[%s1810_s16 + $0x38] sm:$0xff] }
  0x57   : > { %v592_v33 = vld [vmem:[%s1810_s16 + $0x28] sm:$0xff]  ;;  %616 = vperm.xlu1 %1503, %v589_v25   ;;  %606 = vperm.xlu0 %1502, %v587_v26   ;;  %v811_v34 = vadd.f32 %v810_v31, %v809_v29  ;;  %v801_v35 = vsel %vm799_vm2, %v588_v32, 0.0  ;;  %v818_v40 = vsel %vm799_vm2, %v591_v37, 0.0  ;;  %v828_v41 = vsel %vm799_vm2, %v594_v38, 0.0  ;;  %v593_v42 = vld [vmem:[%s1810_s16 + $0x30] sm:$0xff]  ;;  %v1836_v48 = vld [vmem:[%s1810_s16 + $0x40] sm:$0xff] }
  0x58   : > { %v819_v36 = vsel %vm799_vm2, %v592_v33, 0.0  ;;  %v802_v39 = vadd.f32 %v801_v35, %v800_v30  ;;  %v1830_v43 = vld [vmem:[%s1810_s16 + $0x48] sm:$0xff]  ;;  %v827_v46 = vsel %vm799_vm2, %v593_v42, 0.0  ;;  %v836_v51 = vsel %vm799_vm2, %v1836_v48, 0.0  ;;  %v1841_v52 = vld [vmem:[%s1810_s16 + $0x58] sm:$0xff]  ;;  %v1846_v57 = vld [vmem:[%s1810_s16 + $0x50] sm:$0xff] }
  0x59   : > { %v812_v44 = vrot.slane %v811_v34, 4  ;;  %v820_v45 = vadd.f32 %v819_v36, %v818_v40  ;;  %v837_v47 = vsel %vm799_vm2, %v1830_v43, 0.0  ;;  %v829_v50 = vadd.f32 %v828_v41, %v827_v46  ;;  %v1851_v1 = vld [vmem:[%s1810_s16 + $0x68] sm:$0xff]  ;;  %v599_v9 = vld [vmem:[%s1810_s16 + $0x60] sm:$0xff]  ;;  %v602_v17 = vld [vmem:[%s1810_s16 + $0x78] sm:$0xff]  ;;  %p1291_p4 = scmp.ne.s32.totalorder %s1605_s10, 3 }
  0x5a   : > { %v803_v49 = vrot.slane %v802_v39, 4  ;;  %v838_v55 = vadd.f32 %v837_v47, %v836_v51  ;;  %v846_v56 = vsel %vm799_vm2, %v1841_v52, 0.0  ;;  %v845_v60 = vsel %vm799_vm2, %v1846_v57, 0.0  ;;  %v601_v26 = vld [vmem:[%s1810_s16 + $0x70] sm:$0xff] }
  0x5b   : > { %621 = vperm.xlu1 %1503, %v590_v27   ;;  %v813_v53 = vadd.f32 %v812_v44, %v811_v34  ;;  %611 = vperm.xlu0 %1502, %v588_v32   ;;  %v821_v54 = vrot.slane %v820_v45, 4  ;;  %v830_v59 = vrot.slane %v829_v50, 4  ;;  %v847_v0 = vadd.f32 %v846_v56, %v845_v60 }
  0x5c   : > { %v804_v58 = vadd.f32 %v803_v49, %v802_v39  ;;  %v839_v63 = vrot.slane %v838_v55, 4  ;;  %v855_v4 = vsel %vm799_vm2, %v1851_v1, 0.0  ;;  %vm783_vm4 = vcmask 1042434  }
  0x5d   : > { %v814_v61 = vrot.slane %v813_v53, 2  ;;  %v822_v62 = vadd.f32 %v821_v54, %v820_v45  ;;  %v831_v3 = vadd.f32 %v830_v59, %v829_v50  ;;  %v848_v8 = vrot.slane %v847_v0, 4  ;;  %v1336_v59 = vld [vmem:[%s1808_s0 + $0x8] sm:$0xff]  }
  0x5e   : > { %v805_v2 = vrot.slane %v804_v58, 2  ;;  %v840_v7 = vadd.f32 %v839_v63, %v838_v55  ;;  %v854_v12 = vsel %vm799_vm2, %v599_v9, 0.0  ;;  %v864_v21 = vsel %vm799_vm2, %v602_v17, 0.0 }
  0x5f   : > { %v815_v5 = vadd.f32 %v814_v61, %v813_v53  ;;  %631 = vperm.xlu1 %1503, %v592_v33   ;;  %v823_v6 = vrot.slane %v822_v62, 2  ;;  %626 = vperm.xlu0 %1502, %v591_v37   ;;  %v832_v11 = vrot.slane %v831_v3, 2  ;;  %v849_v16 = vadd.f32 %v848_v8, %v847_v0 }
  0x60   : > { %v806_v10 = vadd.f32 %v805_v2, %v804_v58  ;;  %v841_v15 = vrot.slane %v840_v7, 2  ;;  %v856_v20 = vadd.f32 %v855_v4, %v854_v12  ;;  %v863_v30 = vsel %vm799_vm2, %v601_v26, 0.0  ;;  %v1337_v2 = vld [vmem:[%s1808_s0 + $0x10] sm:$0xff]  }
  0x61   : > { %v816_v13 = vrot.slane %v815_v5, 1  ;;  %v824_v14 = vadd.f32 %v823_v6, %v822_v62  ;;  %v833_v19 = vadd.f32 %v832_v11, %v831_v3  ;;  %v850_v25 = vrot.slane %v849_v16, 2  ;;  %v1305_v62 = vld [vmem:[%s1808_s0] sm:$0xff]  }
  0x62   : > { %v807_v18 = vrot.slane %v806_v10, 1  ;;  %v842_v24 = vadd.f32 %v841_v15, %v840_v7  ;;  %v857_v29 = vrot.slane %v856_v20, 4  ;;  %v865_v34 = vadd.f32 %v864_v21, %v863_v30  ;;  %v1339_v21 = vld [vmem:[%s1808_s0 + $0x20] sm:$0xff]  }
  0x63   : > { %v817_v22 = vadd.f32 %v816_v13, %v815_v5  ;;  %v825_v23 = vrot.slane %v824_v14, 1  ;;  %641 = vperm.xlu1 %1503, %v594_v38   ;;  %636 = vperm.xlu0 %1502, %v593_v42   ;;  %v834_v28 = vrot.slane %v833_v19, 1  ;;  %v851_v33 = vadd.f32 %v850_v25, %v849_v16 }
  0x64   : > { %v808_v27 = vadd.f32 %v807_v18, %v806_v10  ;;  %v843_v32 = vrot.slane %v842_v24, 1  ;;  %vm785_vm5 = vcmask 1043459   ;;  %v858_v37 = vadd.f32 %v857_v29, %v856_v20  ;;  %v1338_v10 = vld [vmem:[%s1808_s0 + $0x18] sm:$0xff]  }
  0x65   : > { %v826_v31 = vadd.f32 %v825_v23, %v824_v14  ;;  %v835_v36 = vadd.f32 %v834_v28, %v833_v19  ;;  %v852_v40 = vrot.slane %v851_v33, 1  ;;  %v866_v41 = vrot.slane %v865_v34, 4 }
  0x66   : > { %v880_v35 = vsel %vm781_vm3, %v817_v22, %v808_v27  ;;  %v844_v39 = vadd.f32 %v843_v32, %v842_v24  ;;  %v859_v44 = vrot.slane %v858_v37, 2  ;;  %vm787_vm6 = vcmask 1044484  }
  0x67   : > { %v881_v38 = vsel %vm783_vm4, %v826_v31, %v880_v35  ;;  %651 = vperm.xlu1 %1503, %v1830_v43   ;;  %646 = vperm.xlu0 %1502, %v1836_v48   ;;  %v853_v45 = vadd.f32 %v852_v40, %v851_v33  ;;  %v867_v46 = vadd.f32 %v866_v41, %v865_v34  ;;  %vm789_vm7 = vcmask 1045509   ;;  %v1340_v35 = vld [vmem:[%s1808_s0 + $0x28] sm:$0xff]  }
  0x68   : > { %v882_v42 = vsel %vm785_vm5, %v835_v36, %v881_v38  ;;  %v860_v49 = vadd.f32 %v859_v44, %v858_v37  ;;  %vm791_vm8 = vcmask 1046534   ;;  %vm793_vm9 = vcmask 1047559  }
  0x69   : > { %v883_v47 = vsel %vm787_vm6, %v844_v39, %v882_v42  ;;  %v868_v50 = vrot.slane %v867_v46, 2  ;;  %v1311_v63 = vunpack.c.h.bf16 %v1336_v59  ;;  %v1307_v0 = vunpack.c.h.bf16 %v1305_v62 }
  0x6a   : > { %v861_v43 = vrot.slane %v860_v49, 1  ;;  %v884_v48 = vsel %vm789_vm7, %v853_v45, %v883_v47  ;;  %v1306_v3 = vunpack.c.l.bf16 %v1305_v62  ;;  %v1315_v8 = vunpack.c.h.bf16 %v1337_v2  ;;  %v1342_v62 = vld [vmem:[%s1808_s0 + $0x38] sm:$0xff]  }
  0x6b   : > { %661 = vperm.xlu1 %1503, %v1841_v52   ;;  %656 = vperm.xlu0 %1502, %v1846_v57   ;;  %v869_v51 = vadd.f32 %v868_v50, %v867_v46  ;;  %v798_v52 = vld [vmem:[#allocation3] sm:$0xff]  ;;  %vm700_vm10 = vcmask 261120   ;;  %v1319_v16 = vunpack.c.h.bf16 %v1338_v10  ;;  %v1318_v20 = vunpack.c.l.bf16 %v1338_v10  ;;  %v1341_v50 = vld [vmem:[%s1808_s0 + $0x30] sm:$0xff]  }
  0x6c   : > { %v862_v53 = vadd.f32 %v861_v43, %v860_v49  ;;  %v1323_v30 = vunpack.c.h.bf16 %v1339_v21  ;;  %v1322_v34 = vunpack.c.l.bf16 %v1339_v21  ;;  %v1327_v44 = vunpack.c.h.bf16 %v1340_v35 }
  0x6d   : > { %v870_v54 = vrot.slane %v869_v51, 1  ;;  %v1326_v49 = vunpack.c.l.bf16 %v1340_v35  ;;  %vm1627_vm11 = vmmov (!%p1291_p4), 0  }
  0x6e   : > { %v885_v55 = vsel %vm791_vm8, %v862_v53, %v884_v48 }
  0x6f   : > { %671 = vperm.xlu1 %1503, %v1851_v1   ;;  %666 = vperm.xlu0 %1502, %v599_v9   ;;  %v871_v56 = vadd.f32 %v870_v54, %v869_v51  ;;  %v1310_v1 = vunpack.c.l.bf16 %v1336_v59  ;;  %v1314_v9 = vunpack.c.l.bf16 %v1337_v2 }
  0x71   : > { %v886_v57 = vsel %vm793_vm9, %v871_v56, %v885_v55  ;;  %v1331_v56 = vunpack.c.h.bf16 %v1341_v50 }
  0x72   : > { %v888_v58 = vadd.f32 %v886_v57, %v798_v52  ;;  %v1330_v57 = vunpack.c.l.bf16 %v1341_v50 }
  0x73   : > { %681 = vperm.xlu1 %1503, %v602_v17   ;;  %676 = vperm.xlu0 %1502, %v601_v26  }
  0x74   : > { %889 = vst.msk [vmem:[#allocation3] sm:$0xff] %vm799_vm2, %v888_v58 }
  0xd6   : > { %v617_v60 = vpop.permute.xlu1 %616  ;;  %v607_v61 = vpop.permute.xlu0 %606 }
  0xd7   : > { %v686_v11 = vmul.f32 %v1310_v1, %v617_v60  ;;  %v684_v12 = vmul.f32 %v1306_v3, %v607_v61 }
  0xd9   : > { %v710_v22 = vsel %vm700_vm10, %v686_v11, 0.0  ;;  %v701_v23 = vsel %vm700_vm10, %v684_v12, 0.0 }
  0xda   : > { %v622_v4 = vpop.permute.xlu1 %621  ;;  %v612_v5 = vpop.permute.xlu0 %611 }
  0xdb   : > { %v687_v6 = vmul.f32 %v1311_v63, %v622_v4  ;;  %v685_v7 = vmul.f32 %v1307_v0, %v612_v5 }
  0xdd   : > { %v711_v13 = vsel %vm700_vm10, %v687_v6, 0.0  ;;  %v702_v17 = vsel %vm700_vm10, %v685_v7, 0.0 }
  0xde   : > { %v632_v14 = vpop.permute.xlu1 %631  ;;  %v627_v15 = vpop.permute.xlu0 %626  ;;  %v712_v24 = vadd.f32 %v711_v13, %v710_v22  ;;  %v703_v27 = vadd.f32 %v702_v17, %v701_v23 }
  0xdf   : > { %v689_v18 = vmul.f32 %v1315_v8, %v632_v14  ;;  %v688_v19 = vmul.f32 %v1314_v9, %v627_v15  ;;  %v1335_v8 = vunpack.c.h.bf16 %v1342_v62  ;;  %v1334_v9 = vunpack.c.l.bf16 %v1342_v62 }
  0xe0   : > { %v713_v36 = vrot.slane %v712_v24, 4  ;;  %v704_v39 = vrot.slane %v703_v27, 4 }
  0xe1   : > { %v720_v25 = vsel %vm700_vm10, %v689_v18, 0.0  ;;  %v719_v26 = vsel %vm700_vm10, %v688_v19, 0.0 }
  0xe2   : > { %v642_v28 = vpop.permute.xlu1 %641  ;;  %v637_v29 = vpop.permute.xlu0 %636  ;;  %v721_v31 = vadd.f32 %v720_v25, %v719_v26  ;;  %v714_v48 = vadd.f32 %v713_v36, %v712_v24  ;;  %v705_v54 = vadd.f32 %v704_v39, %v703_v27 }
  0xe3   : > { %v691_v32 = vmul.f32 %v1319_v16, %v642_v28  ;;  %v690_v33 = vmul.f32 %v1318_v20, %v637_v29 }
  0xe4   : > { %v722_v45 = vrot.slane %v721_v31, 4  ;;  %v715_v0 = vrot.slane %v714_v48, 2  ;;  %v706_v4 = vrot.slane %v705_v54, 2 }
  0xe5   : > { %v729_v37 = vsel %vm700_vm10, %v691_v32, 0.0  ;;  %v728_v38 = vsel %vm700_vm10, %v690_v33, 0.0 }
  0xe6   : > { %v730_v40 = vadd.f32 %v729_v37, %v728_v38  ;;  %v652_v41 = vpop.permute.xlu1 %651  ;;  %v647_v42 = vpop.permute.xlu0 %646  ;;  %v723_v58 = vadd.f32 %v722_v45, %v721_v31  ;;  %v716_v16 = vadd.f32 %v715_v0, %v714_v48  ;;  %v707_v20 = vadd.f32 %v706_v4, %v705_v54  ;;  %v895_v4 = vld [vmem:[#allocation3] sm:$0xff] (!%p1291_p4) }
  0xe7   : > { %v693_v46 = vmul.f32 %v1323_v30, %v652_v41  ;;  %v692_v47 = vmul.f32 %v1322_v34, %v647_v42 }
  0xe8   : > { %v731_v43 = vrot.slane %v730_v40, 4  ;;  %v724_v10 = vrot.slane %v723_v58, 2  ;;  %v717_v31 = vrot.slane %v716_v16, 1  ;;  %v708_v35 = vrot.slane %v707_v20, 1 }
  0xe9   : > { %v738_v51 = vsel %vm700_vm10, %v693_v46, 0.0  ;;  %v737_v53 = vsel %vm700_vm10, %v692_v47, 0.0 }
  0xea   : > { %v662_v55 = vpop.permute.xlu1 %661  ;;  %v657_v52 = vpop.permute.xlu0 %656  ;;  %v739_v59 = vadd.f32 %v738_v51, %v737_v53  ;;  %v732_v63 = vadd.f32 %v731_v43, %v730_v40  ;;  %v725_v25 = vadd.f32 %v724_v10, %v723_v58  ;;  %v709_v46 = vadd.f32 %v708_v35, %v707_v20  ;;  %v990_v20 = vld [vmem:[%s2025_s4 + $0x10] sm:$0xff] (!%p1291_p4)  ;;  %v1294_v35 = vld [vmem:[%s2026_s5] ss:$0 sm:$0xff] (!%p1291_p4) }
  0xeb   : > { %v695_v60 = vmul.f32 %v1327_v44, %v662_v55  ;;  %v694_v61 = vmul.f32 %v1326_v49, %v657_v52  ;;  %v718_v44 = vadd.f32 %v717_v31, %v716_v16  ;;  %v1075_v31 = vld [vmem:[%s2027_s6 + $0x10] sm:$0xff] (!%p1291_p4) }
  0xec   : > { %v740_v1 = vrot.slane %v739_v59, 4  ;;  %v733_v14 = vrot.slane %v732_v63, 2  ;;  %v726_v39 = vrot.slane %v725_v25, 1 }
  0xed   : > { %v747_v2 = vsel %vm700_vm10, %v695_v60, 0.0  ;;  %v746_v3 = vsel %vm700_vm10, %v694_v61, 0.0  ;;  %v782_v55 = vsel %vm781_vm3, %v718_v44, %v709_v46 }
  0xee   : > { %v748_v5 = vadd.f32 %v747_v2, %v746_v3  ;;  %v672_v6 = vpop.permute.xlu1 %671  ;;  %v667_v7 = vpop.permute.xlu0 %666  ;;  %v741_v11 = vadd.f32 %v740_v1, %v739_v59  ;;  %v734_v28 = vadd.f32 %v733_v14, %v732_v63  ;;  %v727_v43 = vadd.f32 %v726_v39, %v725_v25  ;;  %v603_v63 = vld [vmem:[#allocation2] sm:$0xff] }
  0xef   : > { %v697_v12 = vmul.f32 %v1331_v56, %v672_v6  ;;  %v696_v13 = vmul.f32 %v1330_v57, %v667_v7  ;;  %v903_v6 = vld [vmem:[%s2023_s2] sm:$0xff] (!%p1291_p4)  ;;  %v904_v7 = vld [vmem:[%s2023_s2 + $0x8] sm:$0xff] (!%p1291_p4) }
  0xf0   : > { %v749_v15 = vrot.slane %v748_v5, 4  ;;  %v742_v17 = vrot.slane %v741_v11, 2  ;;  %v735_v40 = vrot.slane %v734_v28, 1  ;;  %v784_v57 = vsel %vm783_vm4, %v727_v43, %v782_v55 }
  0xf1   : > { %v756_v18 = vsel %vm700_vm10, %v697_v12, 0.0  ;;  %v755_v19 = vsel %vm700_vm10, %v696_v13, 0.0  ;;  %v1392_v10 = vpack.c.bf16 (!%p1291_p4), %v904_v7, %v903_v6  ;;  %v1628_v12 = vmov (!%p1291_p4), 0.0  }
  0xf2   : > { %v750_v21 = vadd.f32 %v749_v15, %v748_v5  ;;  %v757_v22 = vadd.f32 %v756_v18, %v755_v19  ;;  %v682_v23 = vpop.permute.xlu1 %681  ;;  %v677_v24 = vpop.permute.xlu0 %676  ;;  %v743_v32 = vadd.f32 %v742_v17, %v741_v11  ;;  %v736_v48 = vadd.f32 %v735_v40, %v734_v28  ;;  %v906_v11 = vld [vmem:[%s2023_s2 + $0x18] sm:$0xff] (!%p1291_p4)  ;;  %1366 = vmatprep.mubr.msk.f32.mxu0 (!%p1291_p4), %vm1627_vm11, %v1628_v12  ;;  %v988_v18 = vld [vmem:[%s2025_s4] sm:$0xff] (!%p1291_p4)  ;;  %v989_v19 = vld [vmem:[%s2025_s4 + $0x8] sm:$0xff] (!%p1291_p4) }
  0xf3   : > { %v699_v26 = vmul.f32 %v1335_v8, %v682_v23  ;;  %v698_v27 = vmul.f32 %v1334_v9, %v677_v24  ;;  %v1625_v5 = vmov (!%p1291_p4), 0   ;;  %v905_v8 = vld [vmem:[%s2023_s2 + $0x10] sm:$0xff] (!%p1291_p4)  ;;  %v1626_v9 = vmov (!%p1291_p4), 0.0|0.0   ;;  %1377 = vmatprep.mubr.msk.f32.mxu1 (!%p1291_p4), %vm1627_vm11, %v1628_v12  ;;  %v1292_v24 = vld [vmem:[%s2024_s3] ss:$0 sm:$0xff] (!%p1291_p4) }
  0xf4   : > { %v751_v29 = vrot.slane %v750_v21, 2  ;;  %v758_v30 = vrot.slane %v757_v22, 4  ;;  %v744_v45 = vrot.slane %v743_v32, 1  ;;  %v786_v59 = vsel %vm785_vm5, %v736_v48, %v784_v57  ;;  %1504 = vset.pattern.permute.xlu0 (!%p1291_p4), %v1625_v5  ;;  %1391 = vmatprep.subr.bf16.mxu0 (!%p1291_p4), %v1626_v9  ;;  %v1296_v40 = vld [vmem:[%s2028_s7] ss:$0 sm:$0xff] (!%p1291_p4) }
  0xf5   : > { %v765_v33 = vsel %vm700_vm10, %v699_v26, 0.0  ;;  %v764_v34 = vsel %vm700_vm10, %v698_v27, 0.0  ;;  %898 = vperm.xlu0 (!%p1291_p4), %1504, %v895_v4   ;;  %1397 = vmatprep.subr.bf16.mxu1 (!%p1291_p4), %v1626_v9  ;;  %v1395_v13 = vpack.c.bf16 (!%p1291_p4), %v906_v11, %v905_v8 }
  0xf6   : > { %v752_v36 = vadd.f32 %v751_v29, %v750_v21  ;;  %v759_v37 = vadd.f32 %v758_v30, %v757_v22  ;;  %v766_v38 = vadd.f32 %v765_v33, %v764_v34  ;;  %v745_v54 = vadd.f32 %v744_v45, %v743_v32  ;;  %1393 = vmatpush3.bf16.msra.mxu0 (!%p1291_p4), %v1392_v10  ;;  %v991_v22 = vld [vmem:[%s2025_s4 + $0x18] sm:$0xff] (!%p1291_p4)  ;;  %v1073_v29 = vld [vmem:[%s2027_s6] sm:$0xff] (!%p1291_p4)  ;;  %v1074_v30 = vld [vmem:[%s2027_s6 + $0x8] sm:$0xff] (!%p1291_p4) }
  0xf7   : > { %1394 = vmatprep.subr.bf16.mxu0 (!%p1291_p4), %v1626_v9  ;;  %v1398_v21 = vpack.c.bf16 (!%p1291_p4), %v989_v19, %v988_v18  ;;  %v1401_v23 = vpack.c.bf16 (!%p1291_p4), %v991_v22, %v990_v20  ;;  %v1404_v32 = vpack.c.bf16 (!%p1291_p4), %v1074_v30, %v1073_v29  ;;  %v1076_v33 = vld [vmem:[%s2027_s6 + $0x18] sm:$0xff] (!%p1291_p4) }
  0xf8   : > { %v760_v41 = vrot.slane %v759_v37, 2  ;;  %v767_v42 = vrot.slane %v766_v38, 4  ;;  %v753_v47 = vrot.slane %v752_v36, 1  ;;  %v788_v61 = vsel %vm787_vm6, %v745_v54, %v786_v59 }
  0xf9   : > { %1399 = vmatpush3.bf16.msra.mxu1 (!%p1291_p4), %v1398_v21  ;;  %v1407_v34 = vpack.c.bf16 (!%p1291_p4), %v1076_v33, %v1075_v31 }
  0xfa   : > { %v761_v49 = vadd.f32 %v760_v41, %v759_v37  ;;  %v768_v50 = vadd.f32 %v767_v42, %v766_v38  ;;  %v754_v52 = vadd.f32 %v753_v47, %v752_v36  ;;  %1396 = vmatpush3.bf16.msra.mxu0 (!%p1291_p4), %v1395_v13  ;;  %1400 = vmatprep.subr.bf16.mxu1 (!%p1291_p4), %v1626_v9 }
  0xfb   : > { %1403 = vmatprep.subr.bf16.mxu0 (!%p1291_p4), %v1626_v9 }
  0xfc   : > { %v762_v51 = vrot.slane %v761_v49, 1  ;;  %v769_v53 = vrot.slane %v768_v50, 2  ;;  %v790_v62 = vsel %vm789_vm7, %v754_v52, %v788_v61 }
  0xfd   : > { %1402 = vmatpush3.bf16.msra.mxu1 (!%p1291_p4), %v1401_v23 }
  0xfe   : > { %v770_v56 = vadd.f32 %v769_v53, %v768_v50  ;;  %v763_v58 = vadd.f32 %v762_v51, %v761_v49 }
 0x100   : > { %v771_v60 = vrot.slane %v770_v56, 1  ;;  %v792_v1 = vsel %vm791_vm8, %v763_v58, %v790_v62 }
 0x101   : > { %893 = sbr.rel (%p1291_p4) target bundleno = 1051 (0x41b), region = 139 }
 0x102   : > { %v772_v0 = vadd.f32 %v771_v60, %v770_v56 }
 0x104   : > { %v794_v2 = vsel %vm793_vm9, %v772_v0, %v792_v1 }
 0x105   : > { %v796_v3 = vadd.f32 %v794_v2, %v603_v63 }
 0x107   : > { %797 = vst.msk [vmem:[#allocation2] sm:$0xff] %vm700_vm10, %v796_v3 }
 0x10e   : > { %v894_v15 = vld [vmem:[#allocation2] sm:$0xff] }
 0x174   : > { %v899_v14 = vpop.permute.xlu0 %898 }
 0x175   : > { %1505 = vrcp.f32 %v899_v14 }
 0x17f   : > { %v1506_v16 = vpop.eup %1505 }
 0x180   : > { %v902_v17 = vmul.f32 %v1506_v16, %v894_v15 }
 0x182   : > { %1367 = vmatmul.mubr.msk.f32.vlgmr.msra.gmra.mrb[0].mxu0 %vm700_vm10, %v902_v17 }
 0x183   : > { %1388 = vmatprep.mubr.msk.f32.mxu0 %vm1627_vm11, %v1628_v12  ;;  %1405 = vmatpush3.bf16.msra.mxu0 %v1404_v32 }
 0x184   : > { %1406 = vmatprep.subr.bf16.mxu0 %v1626_v9 }
 0x187   : > { %1408 = vmatpush3.bf16.msra.mxu0 %v1407_v34 }
 0x255   : > { %v983_v25 = vpop.f32.mrb[0].mxu0 }
 0x256   : > { %v984_v26 = vadd.f32 %v1292_v24, %v983_v25  ;;  %v1368_v27 = vpop.f32.mrb[1].mxu0 }
 0x258   : > { %1507 = vtanh.f32 %v984_v26 }
 0x262   : > { %v1508_v28 = vpop.eup %1507 }
 0x263   : > { %1378 = vmatmul.mubr.msk.f32.vlgmr.msra.gmra.mrb[0].mxu1 %vm700_vm10, %v1508_v28 }
 0x336   : > { %v1068_v36 = vpop.f32.mrb[0].mxu1 }
 0x337   : > { %v1069_v37 = vadd.f32 %v1294_v35, %v1068_v36  ;;  %v1379_v38 = vpop.f32.mrb[1].mxu1 }
 0x339   : > { %1509 = vtanh.f32 %v1069_v37 }
 0x343   : > { %v1510_v39 = vpop.eup %1509 }
 0x344   : > { %1389 = vmatmul.mubr.msk.f32.vlgmr.msra.gmra.mrb[2].mxu0 %vm700_vm10, %v1510_v39 }
 0x417   : > { %v1153_v41 = vpop.f32.mrb[2].mxu0 }
 0x418   : > { %v1154_v42 = vadd.f32 %v1296_v40, %v1153_v41  ;;  %v1390_v44 = vpop.f32.mrb[3].mxu0 }
 0x41a   : > { %1157 = vst [vmem:[%s542_s20] sm:$0xff] %v1154_v42 }
 0x41b PF: > { %s1299_s18 = sshll.u32 %s1609_s11, 7  ;;  %s1172_s24 = sshll.u32 %s542_s20, 4  ;;  %s1173_s24 = int_to_ptr.vmem [resolvable:$true] %s1172_s24 }
 0x41c   : > { %s1964_s30 = scalar_lea.hbm %s2029_s8, %s1299_s18  ;;  %s1159_s25 = scalar_lea.sflag [#allocation7], %s540_s19 }
 0x41d   : > { %s1511_s22 = scalar_lea.vmem %s1173_s24, 128  ;;  %s1629_s21 = smov [#allocation6]  }
 0x41e   : > { %p1512_p5 = scmp.ne.s32.totalorder %s1173_s24, %s1511_s22  ;;  %s1515_s15 = sshll.u32 %s1629_s21, 4  ;;  %s1516_s15 = int_to_ptr.vmem [resolvable:$false] %s1515_s15 }
 0x41f   : > { %s1517_s10 = scalar_lea.vmem %s1516_s15, 256  ;;  %p1518_p9 = scmp.lt.s32.totalorder %s1173_s24, %s1516_s15 }
 0x420   : > { %p1513_p6 = pnand %p1512_p5, %p1747_p7  ;;  %p1519_p10 = scmp.lt.s32.totalorder %s1517_s10, %s1511_s22 }
 0x422   : > { %p1514_p8 = pneg %p1513_p6  ;;  %p1520_p11 = por %p1519_p10, %p1518_p9 }
 0x424   : > { %p1521_p13 = pnand %p1520_p11, %p1514_p8 }
 0x426   : > { %1524 = shalt.err (!%p1521_p13)
}
 0x427   : > { %s1525_s11 = scalar_lea.hbm %s1964_s30, 128  ;;  %s1529_s20 = scalar_lea.hbm %s2029_s8, 256 }
 0x428   : > { %p1526_p0 = scmp.ne.s32.totalorder %s1964_s30, %s1525_s11  ;;  %p1530_p3 = scmp.lt.u32.totalorder %s1964_s30, %s2029_s8 }
 0x429   : > { %p1531_p4 = scmp.lt.u32.totalorder %s1529_s20, %s1525_s11  ;;  %p1533_p6 = scmp.lt.u32.totalorder %s1525_s11, %s1964_s30 }
 0x42a   : > { %p1527_p1 = pnand %p1526_p0, %p1747_p7 }
 0x42b   : > { %p1532_p5 = por %p1531_p4, %p1530_p3 }
 0x42c   : > { %p1528_p2 = pneg %p1527_p1 }
 0x42d   : > { %p1534_p8 = por %p1533_p6, %p1532_p5 }
 0x42f   : > { %p1535_p9 = pnand %p1534_p8, %p1528_p2 }
 0x431   : > { %1538 = shalt.err (!%p1535_p9)
}
 0x432   : > { %1409 = dma.vmem_to_hbm [thread:$0]  (%p1747_p7), %s1173_s24, 128, %s1964_s30, %s1159_s25  }
 0x433 PF: > { %s2044_s0 = sld [smem:[#allocation9_spill]]  ;;  %p1415_p10 = scmp.ge.s32.totalorder %s1621_s14, 2 }
 0x435   : > { %p1412_p11 = pnand %p1415_p10, %p1755_p12 }
 0x439   : > { %s1184_s22 = sand.u32 1, %s2044_s0  }
 0x43a   : > { %s1185_s21 = scalar_lea.sflag [#allocation7], %s1184_s22 }
 0x43b   : > { %1580 = dma.done.wait (!%p1412_p11), %s1185_s21, 128  }
 0x43c   : > { %1582 = vsyncadd (!%p1412_p11), %s1185_s21, 4294967168  ;;  %s21_s14 = sadd.s32 1, %s1621_s14   ;;  %s2046_s23 = sld [smem:[#allocation13_spill]] }
 0x43d   : > { %p18_p13 = scmp.ge.s32.totalorder %s21_s14, 10   ;;  %s2047_s24 = sld [smem:[#allocation10_spill]] }
 0x43e   : > { %s2048_s25 = sld [smem:[#allocation11_spill]]  ;;  %s2049_s27 = smov %s1589_s28 }
 0x43f   : > { %s2050_s28 = smov %s1593_s29  ;;  %s2051_s29 = smov %s1760_s17 }
 0x440   : > { %s2052_s30 = smov %s1601_s9  ;;  %s2054_s10 = smov %s1613_s12 }
 0x441   : > { %s2055_s11 = smov %s1617_s13  ;;  %20 = sbr.rel (!%p18_p13) target bundleno = 8 (0x8), region = 187 }
 0x442   : > { %s2053_s9 = smov %s2046_s23 }
 0x443   : > { %s2056_s12 = smov %s2047_s24 }
 0x444   : > { %s2057_s13 = smov %s2048_s25 }
 0x448   :  { %1190 = vsyncpa [#allocation7], 1 }
 0x449   :  { %1192 = vsyncpa [#allocation7 + $0x1], 1 }

</bundles_post_ra>
